<compile_context>
chip_gen: v7x
topology: tpu7x:2x2x1
jax: 0.10.0
libtpu: 0.0.40
codegen_flags: <defaults>
</compile_context>

<pallas_src>
import jax
import jax.numpy as jnp
from jax.experimental import pallas as pl
from jax.experimental.pallas import tpu as pltpu


def mlp_kernel(x_ref, w1_ref, b1_ref, w2_ref, b2_ref, w3_ref, b3_ref,
               out_ref, h1_ref, h2_ref):
    # Layer 1: (BM,128) @ (128,32) + (1,32), ReLU  (f32 accumulate on MXU)
    h1 = jnp.dot(x_ref[...], w1_ref[...], preferred_element_type=jnp.float32)
    h1 = jnp.maximum(h1 + b1_ref[...], 0.0)
    h1_ref[...] = h1.astype(h1_ref.dtype)

    # Layer 2: (BM,32) @ (32,16) + (1,16), ReLU
    h2 = jnp.dot(h1, w2_ref[...], preferred_element_type=jnp.float32)
    h2 = jnp.maximum(h2 + b2_ref[...], 0.0)
    h2_ref[...] = h2.astype(h2_ref.dtype)

    # Layer 3: (BM,16) @ (16,2) + (1,2), no activation
    out = jnp.dot(h2, w3_ref[...], preferred_element_type=jnp.float32)
    out = out + b3_ref[...]
    out_ref[...] = out.astype(out_ref.dtype)


def _round_up(n, m):
    return (n + m - 1) // m * m


def mlp_forward(x, w1, b1, w2, b2, w3, b3, block_batch=4096):
    """Returns (out, layer1_out, layer2_out), matching the PyTorch module.

    Weights must be (in, out) (PyTorch weight.T); biases must be (1, out).
    """
    B, F = x.shape
    assert F == 128, f"expected 128 input features, got {F}"

    # Batch tile: multiple of 8 (sublane), capped at `block_batch` (default
    # 4096 -> ~17 MiB double-buffered incl. lane padding, safe for v7x's
    # 64 MiB VMEM) and at ceil(B/2) so the grid has >= 2 steps whenever B > 8
    # (keeps both v7x TensorCores busy via the "parallel" axis).
    half = _round_up(pl.cdiv(B, 2), 8)
    BM = _round_up(max(8, min(block_batch, half)), 8)
    grid = (pl.cdiv(B, BM),)

    # x and the three outputs are tiled over batch; the last (ragged) block is
    # bounded by Pallas, so no host-side pad/slice passes are needed.
    # Weights/biases use constant index_maps -> fetched once, VMEM-resident.
    tiled = lambda n: pl.BlockSpec((BM, n), lambda i: (i, 0))
    resident = lambda shape: pl.BlockSpec(shape, lambda i: (0, 0))

    out, h1, h2 = pl.pallas_call(
        mlp_kernel,
        out_shape=(
            jax.ShapeDtypeStruct((B, 2), x.dtype),    # out
            jax.ShapeDtypeStruct((B, 32), x.dtype),   # layer1_out
            jax.ShapeDtypeStruct((B, 16), x.dtype),   # layer2_out
        ),
        grid=grid,
        in_specs=[
            tiled(128),                                # x
            resident((128, 32)), resident((1, 32)),    # w1, b1
            resident((32, 16)),  resident((1, 16)),    # w2, b2
            resident((16, 2)),   resident((1, 2)),     # w3, b3
        ],
        out_specs=(
            tiled(2),
            tiled(32),
            tiled(16),
        ),
        compiler_params=pltpu.CompilerParams(
            dimension_semantics=("parallel",),
            vmem_limit_bytes=48 * 1024 * 1024,
        ),
    )(x, w1, b1, w2, b2, w3, b3)

    return out, h1, h2


def init_linear_params(key, in_features, out_features):
    # Deterministic init mirroring PyTorch's default U(-1/sqrt(fan_in), 1/sqrt(fan_in)).
    kw, kb = jax.random.split(key)
    bound = 1.0 / (in_features ** 0.5)
    w = jax.random.uniform(kw, (in_features, out_features), jnp.float32,
                           minval=-bound, maxval=bound)
    b = jax.random.uniform(kb, (1, out_features), jnp.float32,
                           minval=-bound, maxval=bound)
    return w, b


if __name__ == "__main__":
    key = jax.random.PRNGKey(0)
    kx, k1, k2, k3 = jax.random.split(key, 4)

    # Small ragged batch (12): BM resolves to 8, giving a 2-step grid with a
    # partial (4-row) last tile -> exercises pipelining, the megacore-friendly
    # multi-step path, and the bounded ragged-tail writeback.
    batch = 12
    x = jax.random.normal(kx, (batch, 128), jnp.float32)

    w1, b1 = init_linear_params(k1, 128, 32)
    w2, b2 = init_linear_params(k2, 32, 16)
    w3, b3 = init_linear_params(k3, 16, 2)

    out, h1, h2 = mlp_forward(x, w1, b1, w2, b2, w3, b3)
    jax.block_until_ready((out, h1, h2))

    # Reference check in plain JAX (f32 throughout, like the PyTorch module).
    h1_ref = jnp.maximum(x @ w1 + b1, 0.0)
    h2_ref = jnp.maximum(h1_ref @ w2 + b2, 0.0)
    out_ref = h2_ref @ w3 + b3
    assert out.shape == (batch, 2) and h1.shape == (batch, 32) and h2.shape == (batch, 16)
    assert jnp.allclose(out, out_ref, atol=1e-5)
    assert jnp.allclose(h1, h1_ref, atol=1e-5)
    assert jnp.allclose(h2, h2_ref, atol=1e-5)

    print("KERNEL_OK")
</pallas_src>

<mosaic_0001>
module attributes {stable_mosaic.version = 11 : i64} {
  func.func @mlp_kernel(%arg0: i32, %arg1: memref<8x128xf32, #tpu.memory_space<vmem>>, %arg2: memref<128x32xf32, #tpu.memory_space<vmem>>, %arg3: memref<1x32xf32, #tpu.memory_space<vmem>>, %arg4: memref<32x16xf32, #tpu.memory_space<vmem>>, %arg5: memref<1x16xf32, #tpu.memory_space<vmem>>, %arg6: memref<16x2xf32, #tpu.memory_space<vmem>>, %arg7: memref<1x2xf32, #tpu.memory_space<vmem>>, %arg8: memref<8x2xf32, #tpu.memory_space<vmem>>, %arg9: memref<8x32xf32, #tpu.memory_space<vmem>>, %arg10: memref<8x16xf32, #tpu.memory_space<vmem>>) attributes {dimension_semantics = [#tpu.dimension_semantics<parallel>], iteration_bounds = array<i64: 2>, scalar_prefetch = 0 : i64, scratch_operands = 0 : i64, tpu.core_type = #tpu.core_type<tc>, window_params = [{transform_indices = @transform_0, window_bounds = array<i64: 8, 128>}, {pipeline_mode = #tpu.pipeline_mode<synchronous>, transform_indices = @transform_1, window_bounds = array<i64: 128, 32>}, {pipeline_mode = #tpu.pipeline_mode<synchronous>, transform_indices = @transform_2, window_bounds = array<i64: 1, 32>}, {pipeline_mode = #tpu.pipeline_mode<synchronous>, transform_indices = @transform_3, window_bounds = array<i64: 32, 16>}, {pipeline_mode = #tpu.pipeline_mode<synchronous>, transform_indices = @transform_4, window_bounds = array<i64: 1, 16>}, {pipeline_mode = #tpu.pipeline_mode<synchronous>, transform_indices = @transform_5, window_bounds = array<i64: 16, 2>}, {pipeline_mode = #tpu.pipeline_mode<synchronous>, transform_indices = @transform_6, window_bounds = array<i64: 1, 2>}, {transform_indices = @transform_7, window_bounds = array<i64: 8, 2>}, {transform_indices = @transform_8, window_bounds = array<i64: 8, 32>}, {transform_indices = @transform_9, window_bounds = array<i64: 8, 16>}]} {
    %c0 = arith.constant 0 : index
    %c0_0 = arith.constant 0 : index
    %0 = vector.load %arg1[%c0, %c0_0] : memref<8x128xf32, #tpu.memory_space<vmem>>, vector<8x128xf32>
    %c0_1 = arith.constant 0 : index
    %c0_2 = arith.constant 0 : index
    %1 = vector.load %arg2[%c0_1, %c0_2] : memref<128x32xf32, #tpu.memory_space<vmem>>, vector<128x32xf32>
    %cst = arith.constant dense<0.000000e+00> : vector<8x32xf32>
    %2 = tpu.matmul %0, %1, %cst {dimension_numbers = #tpu.dot_dimension_numbers<[1], [0], [0], [1], [0, 0, 1, 1], [], []>} : vector<8x128xf32>, vector<128x32xf32>, vector<8x32xf32> -> vector<8x32xf32>
    %c0_3 = arith.constant 0 : index
    %c0_4 = arith.constant 0 : index
    %3 = vector.load %arg3[%c0_3, %c0_4] : memref<1x32xf32, #tpu.memory_space<vmem>>, vector<1x32xf32>
    %4 = vector.broadcast %3 : vector<1x32xf32> to vector<8x32xf32>
    %5 = arith.addf %2, %4 : vector<8x32xf32>
    %cst_5 = arith.constant 0.000000e+00 : f32
    %6 = vector.broadcast %cst_5 : f32 to vector<8x32xf32>
    %7 = arith.maximumf %5, %6 : vector<8x32xf32>
    %c0_6 = arith.constant 0 : index
    %c0_7 = arith.constant 0 : index
    %8 = vector.load %arg9[%c0_6, %c0_7] : memref<8x32xf32, #tpu.memory_space<vmem>>, vector<8x32xf32>
    tpu.vector_store %arg9[%c0_6, %c0_7], %7 {strides = array<i32>} : memref<8x32xf32, #tpu.memory_space<vmem>>, vector<8x32xf32>,
    %c0_8 = arith.constant 0 : index
    %c0_9 = arith.constant 0 : index
    %9 = vector.load %arg4[%c0_8, %c0_9] : memref<32x16xf32, #tpu.memory_space<vmem>>, vector<32x16xf32>
    %cst_10 = arith.constant dense<0.000000e+00> : vector<8x16xf32>
    %10 = tpu.matmul %7, %9, %cst_10 {dimension_numbers = #tpu.dot_dimension_numbers<[1], [0], [0], [1], [0, 0, 1, 1], [], []>} : vector<8x32xf32>, vector<32x16xf32>, vector<8x16xf32> -> vector<8x16xf32>
    %c0_11 = arith.constant 0 : index
    %c0_12 = arith.constant 0 : index
    %11 = vector.load %arg5[%c0_11, %c0_12] : memref<1x16xf32, #tpu.memory_space<vmem>>, vector<1x16xf32>
    %12 = vector.broadcast %11 : vector<1x16xf32> to vector<8x16xf32>
    %13 = arith.addf %10, %12 : vector<8x16xf32>
    %cst_13 = arith.constant 0.000000e+00 : f32
    %14 = vector.broadcast %cst_13 : f32 to vector<8x16xf32>
    %15 = arith.maximumf %13, %14 : vector<8x16xf32>
    %c0_14 = arith.constant 0 : index
    %c0_15 = arith.constant 0 : index
    %16 = vector.load %arg10[%c0_14, %c0_15] : memref<8x16xf32, #tpu.memory_space<vmem>>, vector<8x16xf32>
    tpu.vector_store %arg10[%c0_14, %c0_15], %15 {strides = array<i32>} : memref<8x16xf32, #tpu.memory_space<vmem>>, vector<8x16xf32>,
    %c0_16 = arith.constant 0 : index
    %c0_17 = arith.constant 0 : index
    %17 = vector.load %arg6[%c0_16, %c0_17] : memref<16x2xf32, #tpu.memory_space<vmem>>, vector<16x2xf32>
    %cst_18 = arith.constant dense<0.000000e+00> : vector<8x2xf32>
    %18 = tpu.matmul %15, %17, %cst_18 {dimension_numbers = #tpu.dot_dimension_numbers<[1], [0], [0], [1], [0, 0, 1, 1], [], []>} : vector<8x16xf32>, vector<16x2xf32>, vector<8x2xf32> -> vector<8x2xf32>
    %c0_19 = arith.constant 0 : index
    %c0_20 = arith.constant 0 : index
    %19 = vector.load %arg7[%c0_19, %c0_20] : memref<1x2xf32, #tpu.memory_space<vmem>>, vector<1x2xf32>
    %20 = vector.broadcast %19 : vector<1x2xf32> to vector<8x2xf32>
    %21 = arith.addf %18, %20 : vector<8x2xf32>
    %c0_21 = arith.constant 0 : index
    %c0_22 = arith.constant 0 : index
    %22 = vector.load %arg8[%c0_21, %c0_22] : memref<8x2xf32, #tpu.memory_space<vmem>>, vector<8x2xf32>
    tpu.vector_store %arg8[%c0_21, %c0_22], %21 {strides = array<i32>} : memref<8x2xf32, #tpu.memory_space<vmem>>, vector<8x2xf32>,
    return
  }
  func.func @transform_0(%arg0: i32) -> (i32, i32) {
    %c0_i32 = arith.constant 0 : i32
    %c0_i32_0 = arith.constant 0 : i32
    return %arg0, %c0_i32 : i32, i32
  }
  func.func @transform_1(%arg0: i32) -> (i32, i32) {
    %c0_i32 = arith.constant 0 : i32
    %c0_i32_0 = arith.constant 0 : i32
    %c0_i32_1 = arith.constant 0 : i32
    return %c0_i32, %c0_i32_0 : i32, i32
  }
  func.func @transform_2(%arg0: i32) -> (i32, i32) {
    %c0_i32 = arith.constant 0 : i32
    %c0_i32_0 = arith.constant 0 : i32
    %c0_i32_1 = arith.constant 0 : i32
    return %c0_i32, %c0_i32_0 : i32, i32
  }
  func.func @transform_3(%arg0: i32) -> (i32, i32) {
    %c0_i32 = arith.constant 0 : i32
    %c0_i32_0 = arith.constant 0 : i32
    %c0_i32_1 = arith.constant 0 : i32
    return %c0_i32, %c0_i32_0 : i32, i32
  }
  func.func @transform_4(%arg0: i32) -> (i32, i32) {
    %c0_i32 = arith.constant 0 : i32
    %c0_i32_0 = arith.constant 0 : i32
    %c0_i32_1 = arith.constant 0 : i32
    return %c0_i32, %c0_i32_0 : i32, i32
  }
  func.func @transform_5(%arg0: i32) -> (i32, i32) {
    %c0_i32 = arith.constant 0 : i32
    %c0_i32_0 = arith.constant 0 : i32
    %c0_i32_1 = arith.constant 0 : i32
    return %c0_i32, %c0_i32_0 : i32, i32
  }
  func.func @transform_6(%arg0: i32) -> (i32, i32) {
    %c0_i32 = arith.constant 0 : i32
    %c0_i32_0 = arith.constant 0 : i32
    %c0_i32_1 = arith.constant 0 : i32
    return %c0_i32, %c0_i32_0 : i32, i32
  }
  func.func @transform_7(%arg0: i32) -> (i32, i32) {
    %c0_i32 = arith.constant 0 : i32
    %c0_i32_0 = arith.constant 0 : i32
    return %arg0, %c0_i32 : i32, i32
  }
  func.func @transform_8(%arg0: i32) -> (i32, i32) {
    %c0_i32 = arith.constant 0 : i32
    %c0_i32_0 = arith.constant 0 : i32
    return %arg0, %c0_i32 : i32, i32
  }
  func.func @transform_9(%arg0: i32) -> (i32, i32) {
    %c0_i32 = arith.constant 0 : i32
    %c0_i32_0 = arith.constant 0 : i32
    return %arg0, %c0_i32 : i32, i32
  }
}

</mosaic_0001>

<bundles_post_ra>
// kernel: tpu_custom_call.1
= control target key start
LH: loop header
LB: loop body
LE: loop exit
PB: predicated region body
PF: predicated region fallthrough
CT: control target
= control target key end

     0   :  { %s1319_s0 = inlined_call_operand.vmem [shape: f32[12,128], index: 0, kind: input, shape index: {}]   ;;  %s1320_s1 = inlined_call_operand.vmem [shape: f32[128,32], index: 1, kind: input, shape index: {}]   ;;  %s1321_s2 = inlined_call_operand.vmem [shape: f32[1,32], index: 2, kind: input, shape index: {}]   ;;  %s1322_s3 = inlined_call_operand.vmem [shape: f32[32,16], index: 3, kind: input, shape index: {}]   ;;  %s1323_s4 = inlined_call_operand.vmem [shape: f32[1,16], index: 4, kind: input, shape index: {}]   ;;  %s1324_s5 = inlined_call_operand.vmem [shape: f32[16,2], index: 5, kind: input, shape index: {}]   ;;  %s1325_s6 = inlined_call_operand.vmem [shape: f32[1,2], index: 6, kind: input, shape index: {}]   ;;  %s1326_s7 = inlined_call_operand.vmem [shape: f32[12,2], index: 7, kind: output, shape index: {0}]   ;;  %s1327_s8 = inlined_call_operand.hbm [shape: f32[12,32], index: 8, kind: output, shape index: {1}]   ;;  %s1328_s9 = inlined_call_operand.hbm [shape: f32[12,16], index: 9, kind: output, shape index: {2}]  }
   0x1   :  { %1331 = sst [smem:[#allocation8_spill]] %s1319_s0 }
   0x2   :  { %1332 = sst [smem:[#allocation9_spill]] %s1320_s1 }
   0x3   :  { %1333 = sst [smem:[#allocation10_spill]] %s1321_s2 }
   0x4   :  { %1334 = sst [smem:[#allocation11_spill]] %s1322_s3 }
   0x5   :  { %15 = vsyncpa [#allocation3], 0 }
   0x6   :  { %17 = vsyncpa [#allocation3 + $0x1], 0 }
   0x7   :  { %18 = vsyncpa [#allocation5], 0 }
   0x8   :  { %20 = vsyncpa [#allocation5 + $0x1], 0  ;;  %s1099_s30 = smov 0   ;;  %s1101_s10 = smov 0  }
   0x9   :  { %s1103_s11 = smov 0   ;;  %s1105_s12 = smov 0  }
   0xa LB: > { %s1120_s13 = sadd.s32 4294967295, %s1042_s12   ;;  %s771_s14 = sadd.s32 4294967294, %s1042_s12   ;;  %s1042_s12 = sphi %s1105_s12, %s1346_s12   ;;  %s1038_s11 = sphi %s1103_s11, %s1345_s11   ;;  %s1034_s10 = sphi %s1101_s10, %s1344_s10   ;;  %s1030_s30 = sphi %s1099_s30, %s1343_s30  }
   0xb   : > { %s1124_s15 = sadd.s32 1, %s1042_s12   ;;  %s211_s16 = sadd.s32 1, %s1038_s11 }
   0xc   : > { %s208_s17 = ssub.s32 %s1042_s12, %s1124_s15  ;;  %p221_p0 = scmp.ne.s32.totalorder %s1038_s11, %s1034_s10 }
   0xd   : > { %p209_p1 = scmp.eq.s32.totalorder %s208_s17, 0  ;;  %p222_p2 = scmp.eq.s32.totalorder %s1120_s13, 1 }
   0xe   : > { %p227_p3 = scmp.ne.s32.totalorder %s1034_s10, %s1030_s30  ;;  %p228_p4 = scmp.eq.s32.totalorder %s771_s14, 1 }
   0xf   : > { %s1135_s18 = scalar_select %p209_p1, %s1038_s11, %s211_s16  }
  0x10   : > { %p1137_p5 = por %p222_p2, %p221_p0  ;;  %p1141_p6 = por %p228_p4, %p227_p3 }
  0x11   : > { %p774_p7 = scmp.ge.s32.totalorder %s1042_s12, 1  ;;  %p297_p8 = scmp.lt.s32.totalorder %s1042_s12, 3 }
  0x13   : > { %p298_p9 = pnand %p774_p7, %p297_p8 }
  0x14   : > { %s1337_s1 = sld [smem:[#allocation9_spill]] (!%p298_p9)  ;;  %v1044_v3 = vmov (!%p298_p9), 0.0|0.0   ;;  %vm1045_vm0 = vmmov (!%p298_p9), 0   ;;  %v1046_v6 = vmov (!%p298_p9), 0.0   ;;  %s1338_s3 = sld [smem:[#allocation11_spill]] (!%p298_p9)  ;;  %vm444_vm1 = vcmask (!%p298_p9), 261120  }
  0x15   : > { %301 = sbr.rel (%p298_p9) target bundleno = 707 (0x2c3), region = 48  ;;  %868 = vmatprep.subr.bf16.mxu0 (!%p298_p9), %v1044_v3  ;;  %847 = vmatprep.mubr.msk.f32.mxu0 (!%p298_p9), %vm1045_vm0, %v1046_v6  ;;  %p341_p10 = scmp.lt.s32.totalorder (!%p298_p9), %s1120_s13, 1  ;;  %v533_v38 = vld [vmem:[%s1324_s5] sm:$0xff] (!%p298_p9)  ;;  %v534_v39 = vld [vmem:[%s1324_s5 + $0x8] sm:$0xff] (!%p298_p9)  ;;  %vm531_vm2 = vcmask (!%p298_p9), 130048  }
  0x16   : > { %892 = vmatprep.subr.bf16.mxu1 (!%p298_p9), %v1044_v3  ;;  %858 = vmatprep.mubr.msk.f32.mxu1 (!%p298_p9), %vm1045_vm0, %v1046_v6  ;;  %s1339_s0 = sld [smem:[#allocation8_spill]] (!%p298_p9)  ;;  %s1222_s16 = sand.u32 (!%p298_p9), 1, %s1034_s10   ;;  %v899_v40 = vpack.c.bf16 (!%p298_p9), %v534_v39, %v533_v38  ;;  %v780_v41 = vld [vmem:[%s1323_s4] ss:$0 sm:$0xff] (!%p298_p9) }
  0x17   : > { %s1340_s2 = sld [smem:[#allocation10_spill]] (!%p298_p9)  ;;  %s775_s23 = sshll.u32 (!%p298_p9), %s1222_s16, 3 }
  0x18   : > { %s333_s24 = scalar_lea.vmem (!%p298_p9), [#allocation2], %s775_s23  ;;  %s1239_s21 = scalar_lea.vmem (!%p298_p9), [#allocation4], %s775_s23 }
  0x19   : > { %s643_s26 = sshll.u32 (!%p298_p9), %s333_s24, 4  ;;  %s622_s14 = scalar_lea.sflag (!%p298_p9), [#allocation3], %s1222_s16  ;;  %s644_s26 = int_to_ptr.vmem [resolvable:$true] %s643_s26 }
  0x1a   : > { %v350_v0 = vld [vmem:[%s1337_s1] sm:$0xff] (!%p298_p9)  ;;  %v351_v1 = vld [vmem:[%s1337_s1 + $0x8] sm:$0xff] (!%p298_p9)  ;;  %v352_v2 = vld [vmem:[%s1337_s1 + $0x10] sm:$0xff] (!%p298_p9)  ;;  %s948_s17 = scalar_lea.vmem (!%p298_p9), %s644_s26, 128 }
  0x1b   : > { %v869_v4 = vpack.c.bf16 (!%p298_p9), %v351_v1, %v350_v0  ;;  %v353_v5 = vld [vmem:[%s1337_s1 + $0x18] sm:$0xff] (!%p298_p9)  ;;  %v354_v8 = vld [vmem:[%s1337_s1 + $0x20] sm:$0xff] (!%p298_p9)  ;;  %v355_v9 = vld [vmem:[%s1337_s1 + $0x28] sm:$0xff] (!%p298_p9)  ;;  %p949_p11 = scmp.ne.s32.totalorder (!%p298_p9), %s644_s26, %s948_s17 }
  0x1c   : > { %v872_v7 = vpack.c.bf16 %v353_v5, %v352_v2  ;;  %v446_v10 = vld [vmem:[%s1338_s3] sm:$0xff]  ;;  %v447_v11 = vld [vmem:[%s1338_s3 + $0x8] sm:$0xff]  ;;  %v875_v13 = vpack.c.bf16 %v355_v9, %v354_v8  ;;  %v356_v14 = vld [vmem:[%s1337_s1 + $0x30] sm:$0xff]  ;;  %s1201_s29 = scalar_select %p341_p10, %s1120_s13, 1 }
  0x1d   : > { %870 = vmatpush3.bf16.msra.mxu0 %v869_v4  ;;  %v893_v12 = vpack.c.bf16 %v447_v11, %v446_v10  ;;  %v357_v15 = vld [vmem:[%s1337_s1 + $0x38] sm:$0xff]  ;;  %v358_v17 = vld [vmem:[%s1337_s1 + $0x40] sm:$0xff]  ;;  %v359_v18 = vld [vmem:[%s1337_s1 + $0x48] sm:$0xff]  ;;  %p950_p12 = pnand %p949_p11, %p1137_p5 }
  0x1e   : > { %871 = vmatprep.subr.bf16.mxu0 %v1044_v3  ;;  %v878_v16 = vpack.c.bf16 %v357_v15, %v356_v14  ;;  %v881_v19 = vpack.c.bf16 %v359_v18, %v358_v17  ;;  %v360_v20 = vld [vmem:[%s1337_s1 + $0x50] sm:$0xff]  ;;  %v361_v21 = vld [vmem:[%s1337_s1 + $0x58] sm:$0xff]  ;;  %v362_v23 = vld [vmem:[%s1337_s1 + $0x60] sm:$0xff]  ;;  %s1329_s22 = sshll.u32 %s1201_s29, 3 }
  0x1f   : > { %894 = vmatpush3.bf16.msra.mxu1 %v893_v12  ;;  %v884_v22 = vpack.c.bf16 %v361_v21, %v360_v20  ;;  %v363_v24 = vld [vmem:[%s1337_s1 + $0x68] sm:$0xff]  ;;  %v364_v26 = vld [vmem:[%s1337_s1 + $0x70] sm:$0xff]  ;;  %v365_v27 = vld [vmem:[%s1337_s1 + $0x78] sm:$0xff]  ;;  %s344_s25 = scalar_lea.vmem %s1339_s0, %s1329_s22  ;;  %p951_p13 = pneg %p950_p12 }
  0x20   : > { %895 = vmatprep.subr.bf16.mxu1 %v1044_v3  ;;  %v887_v25 = vpack.c.bf16 %v363_v24, %v362_v23  ;;  %v890_v28 = vpack.c.bf16 %v365_v27, %v364_v26  ;;  %v349_v29 = vld [vmem:[%s344_s25] sm:$0xff]  ;;  %v448_v30 = vld [vmem:[%s1338_s3 + $0x10] sm:$0xff]  ;;  %v449_v31 = vld [vmem:[%s1338_s3 + $0x18] sm:$0xff]  ;;  %s1330_s25 = sshll.u32 %s1120_s13, 7  ;;  %s1047_s0 = smov [#allocation2]  }
  0x21   : > { %873 = vmatpush3.bf16.msra.mxu0 %v872_v7  ;;  %v896_v32 = vpack.c.bf16 %v449_v31, %v448_v30  ;;  %v779_v33 = vld [vmem:[%s1340_s2] ss:$0 sm:$0xff]  ;;  %s1248_s22 = scalar_lea.hbm %s1327_s8, %s1330_s25  ;;  %s952_s23 = sshll.u32 %s1047_s0, 4  ;;  %s953_s23 = int_to_ptr.vmem [resolvable:$false] %s952_s23 }
  0x22   : > { %874 = vmatprep.subr.bf16.mxu0 %v1044_v3  ;;  %s954_s1 = scalar_lea.vmem %s953_s23, 256  ;;  %p955_p0 = scmp.lt.s32.totalorder %s644_s26, %s953_s23 }
  0x23   : > { %897 = vmatpush3.bf16.msra.mxu1 %v896_v32  ;;  %p956_p1 = scmp.lt.s32.totalorder %s954_s1, %s948_s17 }
  0x24   : > { %898 = vmatprep.subr.bf16.mxu1 %v1044_v3 }
  0x25   : > { %876 = vmatpush3.bf16.msra.mxu0 %v875_v13  ;;  %p957_p2 = por %p956_p1, %p955_p0 }
  0x26   : > { %877 = vmatprep.subr.bf16.mxu0 %v1044_v3 }
  0x27   : > { %p958_p3 = pnand %p957_p2, %p951_p13 }
  0x29   : > { %879 = vmatpush3.bf16.msra.mxu0 %v878_v16 }
  0x2a   : > { %880 = vmatprep.subr.bf16.mxu0 %v1044_v3 }
  0x2d   : > { %882 = vmatpush3.bf16.msra.mxu0 %v881_v19 }
  0x2e   : > { %883 = vmatprep.subr.bf16.mxu0 %v1044_v3 }
  0x31   : > { %885 = vmatpush3.bf16.msra.mxu0 %v884_v22 }
  0x32   : > { %886 = vmatprep.subr.bf16.mxu0 %v1044_v3 }
  0x35   : > { %888 = vmatpush3.bf16.msra.mxu0 %v887_v25 }
  0x36   : > { %889 = vmatprep.subr.bf16.mxu0 %v1044_v3 }
  0x39   : > { %891 = vmatpush3.bf16.msra.mxu0 %v890_v28 }
  0x3c   : > { %848 = vmatmul.mubr.f32.vlgmr.msra.gmra.mrb[0].mxu0 %v349_v29 }
 0x10f   : > { %v439_v34 = vpop.f32.mrb[0].mxu0 }
 0x110   : > { %v440_v35 = vadd.f32 %v779_v33, %v439_v34  ;;  %v849_v36 = vpop.f32.mrb[1].mxu0 }
 0x112   : > { %v443_v37 = vmax.f32 %v440_v35, 0.0 }
 0x114   : > { %859 = vmatmul.mubr.msk.f32.vlgmr.msra.gmra.mrb[0].mxu1 %vm444_vm1, %v443_v37  ;;  %445 = vst.msk [vmem:[%s333_s24] sm:$0xff] %vm444_vm1, %v443_v37 }
 0x115   : > { %865 = vmatprep.mubr.msk.f32.mxu1 %vm1045_vm0, %v1046_v6  ;;  %900 = vmatpush3.bf16.msra.mxu1 %v899_v40 }
 0x1e7   : > { %v526_v42 = vpop.f32.mrb[0].mxu1 }
 0x1e8   : > { %v527_v43 = vadd.f32 %v780_v41, %v526_v42  ;;  %v860_v44 = vpop.f32.mrb[1].mxu1 }
 0x1ea   : > { %v530_v45 = vmax.f32 %v527_v43, 0.0 }
 0x1ec   : > { %866 = vmatmul.mubr.msk.f32.vlgmr.msra.gmra.mrb[2].mxu1 %vm531_vm2, %v530_v45  ;;  %532 = vst.msk [vmem:[%s1239_s21] sm:$0xff] %vm531_vm2, %v530_v45 }
 0x1ed   : > { %961 = shalt.err (!%p958_p3)
}
 0x1ee   : > { %s962_s24 = scalar_lea.hbm %s1248_s22, 128  ;;  %s966_s0 = scalar_lea.hbm %s1327_s8, 256 }
 0x1ef   : > { %p963_p4 = scmp.ne.s32.totalorder %s1248_s22, %s962_s24  ;;  %p967_p9 = scmp.lt.u32.totalorder %s1248_s22, %s1327_s8 }
 0x1f0   : > { %p968_p10 = scmp.lt.u32.totalorder %s966_s0, %s962_s24  ;;  %p970_p12 = scmp.lt.u32.totalorder %s962_s24, %s1248_s22 }
 0x1f1   : > { %p964_p7 = pnand %p963_p4, %p1137_p5 }
 0x1f2   : > { %p969_p11 = por %p968_p10, %p967_p9 }
 0x1f3   : > { %p965_p8 = pneg %p964_p7 }
 0x1f4   : > { %p971_p13 = por %p970_p12, %p969_p11 }
 0x1f6   : > { %p972_p0 = pnand %p971_p13, %p965_p8 }
 0x1f8   : > { %975 = shalt.err (!%p972_p0)
}
 0x1f9   : > { %901 = dma.vmem_to_hbm [thread:$0]  (%p1137_p5), %s644_s26, 128, %s1248_s22, %s622_s14  }
 0x1fa   : > { %s1341_s1 = sshll.u32 %s1120_s13, 7  ;;  %s656_s28 = sshll.u32 %s1239_s21, 4  ;;  %s657_s28 = int_to_ptr.vmem [resolvable:$true] %s656_s28 }
 0x1fb   : > { %s1273_s25 = scalar_lea.hbm %s1328_s9, %s1341_s1  ;;  %s627_s24 = scalar_lea.sflag [#allocation5], %s1222_s16 }
 0x1fc   : > { %s976_s0 = scalar_lea.vmem %s657_s28, 128  ;;  %s1048_s23 = smov [#allocation4]  }
 0x1fd   : > { %p977_p1 = scmp.ne.s32.totalorder %s657_s28, %s976_s0  ;;  %s980_s2 = sshll.u32 %s1048_s23, 4  ;;  %s981_s2 = int_to_ptr.vmem [resolvable:$false] %s980_s2 }
 0x1fe   : > { %s982_s3 = scalar_lea.vmem %s981_s2, 256  ;;  %p983_p4 = scmp.lt.s32.totalorder %s657_s28, %s981_s2 }
 0x1ff   : > { %p978_p2 = pnand %p977_p1, %p1137_p5  ;;  %p984_p7 = scmp.lt.s32.totalorder %s982_s3, %s976_s0 }
 0x201   : > { %p979_p3 = pneg %p978_p2  ;;  %p985_p8 = por %p984_p7, %p983_p4 }
 0x203   : > { %p986_p9 = pnand %p985_p8, %p979_p3 }
 0x205   : > { %989 = shalt.err (!%p986_p9)
}
 0x206   : > { %s990_s13 = scalar_lea.hbm %s1273_s25, 128  ;;  %s994_s21 = scalar_lea.hbm %s1328_s9, 256 }
 0x207   : > { %p991_p10 = scmp.ne.s32.totalorder %s1273_s25, %s990_s13  ;;  %p995_p13 = scmp.lt.u32.totalorder %s1273_s25, %s1328_s9 }
 0x208   : > { %p996_p0 = scmp.lt.u32.totalorder %s994_s21, %s990_s13  ;;  %p998_p2 = scmp.lt.u32.totalorder %s990_s13, %s1273_s25 }
 0x209   : > { %p992_p11 = pnand %p991_p10, %p1137_p5 }
 0x20a   : > { %p997_p1 = por %p996_p0, %p995_p13 }
 0x20b   : > { %p993_p12 = pneg %p992_p11 }
 0x20c   : > { %p999_p3 = por %p998_p2, %p997_p1 }
 0x20e   : > { %p1000_p4 = pnand %p999_p3, %p993_p12 }
 0x210   : > { %1003 = shalt.err (!%p1000_p4)
}
 0x211   : > { %902 = dma.vmem_to_hbm [thread:$0]  (%p1137_p5), %s657_s28, 128, %s1273_s25, %s627_s24   ;;  %v782_v46 = vld [vmem:[%s1325_s6] ss:$0 sm:$0xff]  ;;  %vm615_vm3 = vcmask 15360  }
 0x212   : > { %s1342_s1 = sshll.u32 %s1201_s29, 3 }
 0x213   : > { %s348_s0 = scalar_lea.vmem %s1326_s7, %s1342_s1 }
 0x2bf   : > { %v611_v47 = vpop.f32.mrb[2].mxu1 }
 0x2c0   : > { %v612_v48 = vadd.f32 %v782_v46, %v611_v47  ;;  %v867_v49 = vpop.f32.mrb[3].mxu1 }
 0x2c2   : > { %616 = vst.msk [vmem:[%s348_s0] sm:$0xff] %vm615_vm3, %v612_v48 }
 0x2c3 PF: > { %p912_p7 = scmp.ge.s32.totalorder %s1042_s12, 2  ;;  %s675_s19 = sand.u32 1, %s1030_s30  }
 0x2c4   : > { %s676_s25 = scalar_lea.sflag [#allocation3], %s675_s19 }
 0x2c5   : > { %p906_p5 = pnand %p912_p7, %p1141_p6 }
 0x2c7   : > { %1021 = dma.done.wait (!%p906_p5), %s676_s25, 128  }
 0x2c8   : > { %1023 = vsyncadd (!%p906_p5), %s676_s25, 4294967168  ;;  %s685_s29 = scalar_lea.sflag [#allocation5], %s675_s19 }
 0x2c9   : > { %1025 = dma.done.wait (!%p906_p5), %s685_s29, 128  }
 0x2ca   : > { %1027 = vsyncadd (!%p906_p5), %s685_s29, 4294967168  ;;  %p23_p8 = scmp.ge.s32.totalorder %s1124_s15, 4   ;;  %s1343_s30 = smov %s1034_s10 }
 0x2cb   : > { %s1344_s10 = smov %s1038_s11  ;;  %s1345_s11 = smov %s1135_s18 }
 0x2cc   : > { %s1346_s12 = smov %s1124_s15  ;;  %25 = sbr.rel (!%p23_p8) target bundleno = 10 (0xa), region = 112 }
 0x2d3   :  { %690 = vsyncpa [#allocation3], 1 }
 0x2d4   :  { %692 = vsyncpa [#allocation3 + $0x1], 1 }
 0x2d5   :  { %693 = vsyncpa [#allocation5], 1 }
 0x2d6   :  { %695 = vsyncpa [#allocation5 + $0x1], 1 }

</bundles_post_ra>
